<compile_context>
chip_gen: v7x
topology: tpu7x:2x2x1
jax: 0.10.0
libtpu: 0.0.40
codegen_flags: <defaults>
</compile_context>

<pallas_src>
import jax
import jax.numpy as jnp
from jax.experimental import pallas as pl
from jax.experimental.pallas import tpu as pltpu

LANE = 128
SUBLANE = 8


def _round_up(x, m):
    return (x + m - 1) // m * m


def parser_mlp_kernel(x_ref, w1_ref, b1_ref, w2_ref, b2_ref, o_ref):
    # x: [TB, Dp] (bf16), w1: [Dp, Hp] (bf16), b1: [1, Hp] (f32)
    # w2: [Hp, Cp] (bf16), b2: [1, Cp] (f32), o: [TB, Cp] (f32)
    # Layer 1: MXU matmul with f32 accumulation, bias + cubic in f32 on the VPU.
    h = jnp.dot(x_ref[...], w1_ref[...], preferred_element_type=jnp.float32)
    h = h + b1_ref[...]
    h3 = h * h * h
    # TODO(synk): nn.Dropout is identity at inference; training-mode dropout
    # (pltpu.prng_random_bits mask) is not emitted here.
    # Layer 2: cast the (f32-computed) activations to the MXU dtype only for the dot.
    out = jnp.dot(h3.astype(w2_ref.dtype), w2_ref[...],
                  preferred_element_type=jnp.float32)
    out = out + b2_ref[...]
    o_ref[...] = jnp.maximum(out, 0.0).astype(o_ref.dtype)


def prepare_parser_params(params, *, use_bf16=True):
    """One-time preprocessing (outside the hot path):
    - stack word/pos/dep embedding tables so the wrapper does a single gather,
    - zero-pad the MLP weights lane-dense (feature dims -> multiples of 128),
    - cast the matmul operands to bf16 (biases stay f32; accumulation is f32)."""
    mxu_dtype = jnp.bfloat16 if use_bf16 else jnp.float32

    emb_table = jnp.concatenate(
        [params["word_emb"], params["pos_emb"], params["dep_emb"]], axis=0
    ).astype(jnp.float32)
    off_pos = params["word_emb"].shape[0]
    off_dep = off_pos + params["pos_emb"].shape[0]

    w1 = params["w1"]
    b1 = params["b1"].reshape(1, -1)
    w2 = params["w2"]
    b2 = params["b2"].reshape(1, -1)
    d_in, hid = w1.shape
    n_cls = w2.shape[1]
    dp = _round_up(d_in, LANE)
    hp = _round_up(hid, LANE)
    cp = _round_up(n_cls, LANE)

    # Zero-padding is semantics-preserving: padded h columns are 0 (+ zero bias),
    # cube to 0 and contribute nothing; padded out columns are sliced away.
    w1p = jnp.zeros((dp, hp), jnp.float32).at[:d_in, :hid].set(w1).astype(mxu_dtype)
    w2p = jnp.zeros((hp, cp), jnp.float32).at[:hid, :n_cls].set(w2).astype(mxu_dtype)
    b1p = jnp.zeros((1, hp), jnp.float32).at[:, :hid].set(b1)
    b2p = jnp.zeros((1, cp), jnp.float32).at[:, :n_cls].set(b2)

    return dict(emb_table=emb_table, off_pos=off_pos, off_dep=off_dep,
                w1=w1p, b1=b1p, w2=w2p, b2=b2p,
                d_in=d_in, num_classes=n_cls)


def parser_forward(emb, w1p, b1p, w2p, b2p, num_classes, *,
                   block_b=512, vmem_limit_bytes=32 << 20):
    """emb: [B, D_in] f32; weights pre-padded lane-dense and pre-cast."""
    B, d_in = emb.shape
    dp, hp = w1p.shape
    cp = w2p.shape[1]
    in_itemsize = jnp.dtype(w1p.dtype).itemsize

    # Batch tile: >=512 rows for real parser batches, rounded to the sublane (8)
    # otherwise; shrink until double-buffered tiles + resident weights fit the
    # scoped VMEM budget (v7x has only 64 MiB physical / 32 MiB default scoped).
    tb = min(block_b, _round_up(B, SUBLANE))

    def _vmem_bytes(t):
        return (2 * t * dp * in_itemsize          # double-buffered x tile
                + 2 * t * cp * 4                  # double-buffered out tile
                + dp * hp * in_itemsize           # resident w1
                + hp * cp * in_itemsize           # resident w2
                + (hp + cp) * 4)                  # biases

    while tb > SUBLANE and _vmem_bytes(tb) > (3 * vmem_limit_bytes) // 4:
        tb = max(SUBLANE, tb // 2)

    bp = _round_up(B, tb)
    x = jnp.zeros((bp, dp), jnp.float32).at[:B, :d_in].set(emb).astype(w1p.dtype)

    cost = pl.CostEstimate(
        flops=2 * bp * (dp * hp + hp * cp),
        transcendentals=0,
        bytes_accessed=(x.size * in_itemsize
                        + w1p.size * in_itemsize + w2p.size * in_itemsize
                        + (hp + cp) * 4
                        + bp * cp * 4),
    )

    out_padded = pl.pallas_call(
        parser_mlp_kernel,
        out_shape=jax.ShapeDtypeStruct((bp, cp), jnp.float32),
        grid=(bp // tb,),
        in_specs=[
            pl.BlockSpec((tb, dp), lambda i: (i, 0)),   # batch-tiled activations
            pl.BlockSpec((dp, hp), lambda i: (0, 0)),   # resident weights/biases
            pl.BlockSpec((1, hp), lambda i: (0, 0)),
            pl.BlockSpec((hp, cp), lambda i: (0, 0)),
            pl.BlockSpec((1, cp), lambda i: (0, 0)),
        ],
        out_specs=pl.BlockSpec((tb, cp), lambda i: (i, 0)),
        compiler_params=pltpu.CompilerParams(
            dimension_semantics=("parallel",),          # v7x: shard batch over 2 TCs
            vmem_limit_bytes=vmem_limit_bytes),
        cost_estimate=cost,
    )(x, w1p, b1p, w2p, b2p)

    return out_padded[:B, :num_classes]


def parser_model_apply(word_idx, pos_idx, dep_idx, prepped, *, block_b=512):
    """Full forward: one fused embedding gather + Pallas MLP kernel."""
    # torch.cat((w,p,d), dim=1).view(B, -1) == single gather from the stacked table.
    idx = jnp.concatenate(
        [word_idx, pos_idx + prepped["off_pos"], dep_idx + prepped["off_dep"]],
        axis=1)
    B = idx.shape[0]
    emb = jnp.take(prepped["emb_table"], idx, axis=0).reshape(B, -1)
    return parser_forward(emb, prepped["w1"], prepped["b1"], prepped["w2"],
                          prepped["b2"], prepped["num_classes"], block_b=block_b)


if __name__ == "__main__":
    # Small synthetic config (mirrors ParserModel.__init__ shapes)
    embedding_dim = 16
    n_w, n_p, n_d = 4, 2, 2                     # word/pos/dep feature counts
    d_in = embedding_dim * (n_w + n_p + n_d)    # 128
    l1_hidden_size = 64
    num_classes = 3                             # shift / reduce-left / reduce-right
    vocab_w, vocab_p, vocab_d = 50, 20, 15
    batch = 8

    key = jax.random.PRNGKey(0)
    keys = jax.random.split(key, 8)
    initrange = 0.1

    params = {
        "word_emb": jax.random.normal(keys[0], (vocab_w, embedding_dim), jnp.float32) * 0.1,
        "pos_emb":  jax.random.normal(keys[1], (vocab_p, embedding_dim), jnp.float32) * 0.1,
        "dep_emb":  jax.random.normal(keys[2], (vocab_d, embedding_dim), jnp.float32) * 0.1,
        # nn.Linear weights, uniform(-0.1, 0.1), biases zero, pre-transposed [in, out]
        "w1": jax.random.uniform(keys[3], (d_in, l1_hidden_size), jnp.float32,
                                 minval=-initrange, maxval=initrange),
        "b1": jnp.zeros((1, l1_hidden_size), jnp.float32),
        "w2": jax.random.uniform(keys[4], (l1_hidden_size, num_classes), jnp.float32,
                                 minval=-initrange, maxval=initrange),
        "b2": jnp.zeros((1, num_classes), jnp.float32),
    }

    word_idx = jax.random.randint(keys[5], (batch, n_w), 0, vocab_w)
    pos_idx  = jax.random.randint(keys[6], (batch, n_p), 0, vocab_p)
    dep_idx  = jax.random.randint(keys[7], (batch, n_d), 0, vocab_d)

    prepped = prepare_parser_params(params, use_bf16=True)
    out = parser_model_apply(word_idx, pos_idx, dep_idx, prepped)
    out = jax.block_until_ready(out)
    assert out.shape == (batch, num_classes)

    # Reference embeddings (torch.cat + view semantics), in f32.
    w_e = jnp.take(params["word_emb"], word_idx, axis=0)
    p_e = jnp.take(params["pos_emb"], pos_idx, axis=0)
    d_e = jnp.take(params["dep_emb"], dep_idx, axis=0)
    emb = jnp.concatenate([w_e, p_e, d_e], axis=1).reshape(batch, -1)

    # Strict check: same bf16 MXU inputs / f32 accumulation, computed in plain JAX.
    w1_bf = params["w1"].astype(jnp.bfloat16)
    w2_bf = params["w2"].astype(jnp.bfloat16)
    h = jnp.dot(emb.astype(jnp.bfloat16), w1_bf,
                preferred_element_type=jnp.float32) + params["b1"]
    h3 = h * h * h
    ref_bf = jnp.maximum(
        jnp.dot(h3.astype(jnp.bfloat16), w2_bf,
                preferred_element_type=jnp.float32) + params["b2"], 0.0)
    assert jnp.allclose(out, ref_bf, atol=1e-5, rtol=1e-3)

    # Loose check: pure-f32 PyTorch-equivalent reference (bf16 rounding tolerance).
    ref_f32 = jnp.maximum(
        ((emb @ params["w1"] + params["b1"]) ** 3) @ params["w2"] + params["b2"], 0.0)
    assert jnp.allclose(out, ref_f32, atol=1e-4, rtol=5e-2)

    print("KERNEL_OK")
</pallas_src>

<mosaic_0001>
module attributes {stable_mosaic.version = 11 : i64} {
  func.func @parser_mlp_kernel(%arg0: i32, %arg1: memref<8x128xbf16, #tpu.memory_space<vmem>>, %arg2: memref<128x128xbf16, #tpu.memory_space<vmem>>, %arg3: memref<1x128xf32, #tpu.memory_space<vmem>>, %arg4: memref<128x128xbf16, #tpu.memory_space<vmem>>, %arg5: memref<1x128xf32, #tpu.memory_space<vmem>>, %arg6: memref<8x128xf32, #tpu.memory_space<vmem>>) attributes {dimension_semantics = [#tpu.dimension_semantics<parallel>], iteration_bounds = array<i64: 1>, scalar_prefetch = 0 : i64, scratch_operands = 0 : i64, tpu.core_type = #tpu.core_type<tc>, window_params = [{transform_indices = @transform_0, window_bounds = array<i64: 8, 128>}, {pipeline_mode = #tpu.pipeline_mode<synchronous>, transform_indices = @transform_1, window_bounds = array<i64: 128, 128>}, {pipeline_mode = #tpu.pipeline_mode<synchronous>, transform_indices = @transform_2, window_bounds = array<i64: 1, 128>}, {pipeline_mode = #tpu.pipeline_mode<synchronous>, transform_indices = @transform_3, window_bounds = array<i64: 128, 128>}, {pipeline_mode = #tpu.pipeline_mode<synchronous>, transform_indices = @transform_4, window_bounds = array<i64: 1, 128>}, {transform_indices = @transform_5, window_bounds = array<i64: 8, 128>}]} {
    %c0 = arith.constant 0 : index
    %c0_0 = arith.constant 0 : index
    %0 = vector.load %arg1[%c0, %c0_0] : memref<8x128xbf16, #tpu.memory_space<vmem>>, vector<8x128xbf16>
    %c0_1 = arith.constant 0 : index
    %c0_2 = arith.constant 0 : index
    %1 = vector.load %arg2[%c0_1, %c0_2] : memref<128x128xbf16, #tpu.memory_space<vmem>>, vector<128x128xbf16>
    %cst = arith.constant dense<0.000000e+00> : vector<8x128xf32>
    %2 = tpu.matmul %0, %1, %cst {dimension_numbers = #tpu.dot_dimension_numbers<[1], [0], [0], [1], [0, 0, 1, 1], [], []>} : vector<8x128xbf16>, vector<128x128xbf16>, vector<8x128xf32> -> vector<8x128xf32>
    %c0_3 = arith.constant 0 : index
    %c0_4 = arith.constant 0 : index
    %3 = vector.load %arg3[%c0_3, %c0_4] : memref<1x128xf32, #tpu.memory_space<vmem>>, vector<1x128xf32>
    %4 = vector.broadcast %3 : vector<1x128xf32> to vector<8x128xf32>
    %5 = arith.addf %2, %4 : vector<8x128xf32>
    %6 = arith.mulf %5, %5 : vector<8x128xf32>
    %7 = arith.mulf %6, %5 : vector<8x128xf32>
    %8 = arith.truncf %7 : vector<8x128xf32> to vector<8x128xbf16>
    %c0_5 = arith.constant 0 : index
    %c0_6 = arith.constant 0 : index
    %9 = vector.load %arg4[%c0_5, %c0_6] : memref<128x128xbf16, #tpu.memory_space<vmem>>, vector<128x128xbf16>
    %cst_7 = arith.constant dense<0.000000e+00> : vector<8x128xf32>
    %10 = tpu.matmul %8, %9, %cst_7 {dimension_numbers = #tpu.dot_dimension_numbers<[1], [0], [0], [1], [0, 0, 1, 1], [], []>} : vector<8x128xbf16>, vector<128x128xbf16>, vector<8x128xf32> -> vector<8x128xf32>
    %c0_8 = arith.constant 0 : index
    %c0_9 = arith.constant 0 : index
    %11 = vector.load %arg5[%c0_8, %c0_9] : memref<1x128xf32, #tpu.memory_space<vmem>>, vector<1x128xf32>
    %12 = vector.broadcast %11 : vector<1x128xf32> to vector<8x128xf32>
    %13 = arith.addf %10, %12 : vector<8x128xf32>
    %cst_10 = arith.constant 0.000000e+00 : f32
    %14 = vector.broadcast %cst_10 : f32 to vector<8x128xf32>
    %15 = arith.maximumf %13, %14 : vector<8x128xf32>
    %c0_11 = arith.constant 0 : index
    %c0_12 = arith.constant 0 : index
    %16 = vector.load %arg6[%c0_11, %c0_12] : memref<8x128xf32, #tpu.memory_space<vmem>>, vector<8x128xf32>
    tpu.vector_store %arg6[%c0_11, %c0_12], %15 {strides = array<i32>} : memref<8x128xf32, #tpu.memory_space<vmem>>, vector<8x128xf32>,
    return
  }
  func.func @transform_0(%arg0: i32) -> (i32, i32) {
    %c0_i32 = arith.constant 0 : i32
    %c0_i32_0 = arith.constant 0 : i32
    return %arg0, %c0_i32 : i32, i32
  }
  func.func @transform_1(%arg0: i32) -> (i32, i32) {
    %c0_i32 = arith.constant 0 : i32
    %c0_i32_0 = arith.constant 0 : i32
    %c0_i32_1 = arith.constant 0 : i32
    return %c0_i32, %c0_i32_0 : i32, i32
  }
  func.func @transform_2(%arg0: i32) -> (i32, i32) {
    %c0_i32 = arith.constant 0 : i32
    %c0_i32_0 = arith.constant 0 : i32
    %c0_i32_1 = arith.constant 0 : i32
    return %c0_i32, %c0_i32_0 : i32, i32
  }
  func.func @transform_3(%arg0: i32) -> (i32, i32) {
    %c0_i32 = arith.constant 0 : i32
    %c0_i32_0 = arith.constant 0 : i32
    %c0_i32_1 = arith.constant 0 : i32
    return %c0_i32, %c0_i32_0 : i32, i32
  }
  func.func @transform_4(%arg0: i32) -> (i32, i32) {
    %c0_i32 = arith.constant 0 : i32
    %c0_i32_0 = arith.constant 0 : i32
    %c0_i32_1 = arith.constant 0 : i32
    return %c0_i32, %c0_i32_0 : i32, i32
  }
  func.func @transform_5(%arg0: i32) -> (i32, i32) {
    %c0_i32 = arith.constant 0 : i32
    %c0_i32_0 = arith.constant 0 : i32
    return %arg0, %c0_i32 : i32, i32
  }
}

</mosaic_0001>

<bundles_post_ra>
// kernel: tpu_custom_call.1
= control target key start
LH: loop header
LB: loop body
LE: loop exit
PB: predicated region body
PF: predicated region fallthrough
CT: control target
= control target key end

     0   :  { %10 = vsyncpa [#allocation3], 0  ;;  %s597_s0 = inlined_call_operand.hbm [shape: bf16[8,128], index: 0, kind: input, shape index: {}]   ;;  %s598_s1 = inlined_call_operand.hbm [shape: bf16[128,128], index: 1, kind: input, shape index: {}]   ;;  %s599_s2 = inlined_call_operand.vmem [shape: f32[1,128], index: 2, kind: input, shape index: {}]   ;;  %s600_s3 = inlined_call_operand.hbm [shape: bf16[128,128], index: 3, kind: input, shape index: {}]   ;;  %s601_s4 = inlined_call_operand.vmem [shape: f32[1,128], index: 4, kind: input, shape index: {}]   ;;  %s602_s5 = inlined_call_operand.hbm [shape: f32[8,128], index: 5, kind: output, shape index: {}]  }
   0x1   :  { %11 = vsyncpa [#allocation6], 0 }
   0x2   :  { %12 = vsyncpa [#allocation4], 0  ;;  %s499_s18 = smov [#allocation5]   ;;  %s405_s22 = scalar_lea.hbm %s598_s1, 1024 }
   0x3   :  { %s28_s19 = sshll.u32 %s499_s18, 4  ;;  %p406_p0 = scmp.ne.s32.totalorder %s598_s1, %s405_s22  ;;  %s29_s19 = int_to_ptr.vmem [resolvable:$true] %s28_s19 }
   0x4   :  { %p409_p1 = scmp.lt.u32.totalorder %s405_s22, %s598_s1 }
   0x6   :  { %p411_p2 = pnand %p409_p1, %p406_p0 }
   0x8   :  { %414 = shalt.err (!%p411_p2)
}
   0x9   :  { %s415_s27 = scalar_lea.vmem %s29_s19, 1024  ;;  %p420_p4 = scmp.lt.s32.totalorder %s29_s19, %s29_s19 }
   0xa   :  { %p416_p3 = scmp.ne.s32.totalorder %s29_s19, %s415_s27  ;;  %p421_p5 = scmp.lt.s32.totalorder %s415_s27, %s415_s27 }
   0xc   :  { %p422_p6 = por %p421_p5, %p420_p4 }
   0xe   :  { %p423_p7 = pnand %p422_p6, %p416_p3 }
  0x10   :  { %426 = shalt.err (!%p423_p7)
}
  0x11   :  { %s500_s28 = smov 64   ;;  %s501_s29 = smov 4  }
  0x12   :  { %34 = dma.hbm_to_vmem [thread:$0]  %s598_s1, 1024, %s29_s19, [#allocation6], %s500_s28, %s500_s28, %s501_s29  }
  0x13   :  { %s502_s7 = smov [#allocation2]   ;;  %s503_s9 = smov [#allocation7]  }
  0x14   :  { %s19_s8 = sshll.u32 %s502_s7, 4  ;;  %s42_s10 = sshll.u32 %s503_s9, 4  ;;  %s20_s8 = int_to_ptr.vmem [resolvable:$true] %s19_s8  ;;  %s43_s10 = int_to_ptr.vmem [resolvable:$true] %s42_s10 }
  0x15   :  { %s427_s13 = scalar_lea.hbm %s597_s0, 64 }
  0x16   :  { %p428_p8 = scmp.ne.s32.totalorder %s597_s0, %s427_s13  ;;  %p431_p9 = scmp.lt.u32.totalorder %s427_s13, %s597_s0 }
  0x18   :  { %p433_p10 = pnand %p431_p9, %p428_p8 }
  0x1a   :  { %436 = shalt.err (!%p433_p10)
}
  0x1b   :  { %s437_s1 = scalar_lea.vmem %s20_s8, 64  ;;  %p442_p12 = scmp.lt.s32.totalorder %s20_s8, %s20_s8 }
  0x1c   :  { %p438_p11 = scmp.ne.s32.totalorder %s20_s8, %s437_s1  ;;  %p443_p13 = scmp.lt.s32.totalorder %s437_s1, %s437_s1 }
  0x1e   :  { %p444_p0 = por %p443_p13, %p442_p12 }
  0x20   :  { %p445_p1 = pnand %p444_p0, %p438_p11 }
  0x22   :  { %448 = shalt.err (!%p445_p1)
}
  0x23   :  { %22 = dma.hbm_to_vmem [thread:$0]  %s597_s0, 64, %s20_s8, [#allocation3]  }
  0x24   :  { %s449_s22 = scalar_lea.hbm %s600_s3, 1024 }
  0x25   :  { %p450_p2 = scmp.ne.s32.totalorder %s600_s3, %s449_s22  ;;  %p453_p3 = scmp.lt.u32.totalorder %s449_s22, %s600_s3 }
  0x27   :  { %p455_p4 = pnand %p453_p3, %p450_p2 }
  0x29   :  { %458 = shalt.err (!%p455_p4)
}
  0x2a   :  { %s459_s27 = scalar_lea.vmem %s43_s10, 1024  ;;  %p464_p6 = scmp.lt.s32.totalorder %s43_s10, %s43_s10 }
  0x2b   :  { %p460_p5 = scmp.ne.s32.totalorder %s43_s10, %s459_s27  ;;  %p465_p7 = scmp.lt.s32.totalorder %s459_s27, %s459_s27 }
  0x2d   :  { %p466_p8 = por %p465_p7, %p464_p6 }
  0x2f   :  { %p467_p9 = pnand %p466_p8, %p460_p5 }
  0x31   :  { %470 = shalt.err (!%p467_p9)
}
  0x32   :  { %48 = dma.hbm_to_vmem [thread:$0]  %s600_s3, 1024, %s43_s10, [#allocation6], %s500_s28, %s500_s28, %s501_s29  }
  0x33   :  { %493 = dma.done.wait [#allocation3], 64  }
  0x34   :  { %494 = vsyncadd [#allocation3], 4294967232 }
  0x35   :  { %495 = dma.done.wait [#allocation6], 2048  }
  0x36   :  { %496 = vsyncadd [#allocation6], 4294965248  ;;  %v504_v0 = vmov 0.0   ;;  %vm505_vm0 = vmmov 0   ;;  %v389_v1 = vld [vmem:[#allocation5] sm:$0xff]   ;;  %v390_v2 = vld [vmem:[#allocation5 + $0x8] sm:$0xff]  }
  0x37   :  { %341 = vmatprep.subr.bf16.mxu0 %v504_v0  ;;  %357 = vmatprep.mubr.msk.bf16.mxu0 %vm505_vm0, %v504_v0  ;;  %v391_v3 = vld [vmem:[#allocation5 + $0x10] sm:$0xff]   ;;  %v397_v4 = vld [vmem:[#allocation7] sm:$0xff]   ;;  %v392_v5 = vld [vmem:[#allocation5 + $0x18] sm:$0xff]   ;;  %s506_s7 = smov [#allocation8]  }
  0x38   :  { %361 = vmatprep.subr.bf16.mxu1 %v504_v0  ;;  %377 = vmatprep.mubr.msk.bf16.mxu1 %vm505_vm0, %v504_v0  ;;  %v398_v6 = vld [vmem:[#allocation7 + $0x8] sm:$0xff]   ;;  %v393_v7 = vld [vmem:[#allocation5 + $0x20] sm:$0xff]   ;;  %v399_v8 = vld [vmem:[#allocation7 + $0x10] sm:$0xff]   ;;  %s295_s8 = sshll.u32 %s506_s7, 4  ;;  %s296_s8 = int_to_ptr.vmem [resolvable:$true] %s295_s8 }
  0x39   :  { %342 = vmatpush3.bf16.msra.mxu0 %v389_v1  ;;  %362 = vmatpush3.bf16.msra.mxu1 %v397_v4  ;;  %v394_v9 = vld [vmem:[#allocation5 + $0x28] sm:$0xff]   ;;  %v400_v10 = vld [vmem:[#allocation7 + $0x18] sm:$0xff]   ;;  %v395_v11 = vld [vmem:[#allocation5 + $0x30] sm:$0xff]   ;;  %p476_p11 = scmp.lt.s32.totalorder %s296_s8, %s296_s8 }
  0x3a   :  { %343 = vmatprep.subr.bf16.mxu0 %v504_v0  ;;  %363 = vmatprep.subr.bf16.mxu1 %v504_v0  ;;  %v401_v12 = vld [vmem:[#allocation7 + $0x20] sm:$0xff]   ;;  %v396_v13 = vld [vmem:[#allocation5 + $0x38] sm:$0xff]   ;;  %v402_v14 = vld [vmem:[#allocation7 + $0x28] sm:$0xff]  }
  0x3b   :  { %v61_v15 = vld [vmem:[#allocation2] sm:$0xf]  ;;  %v403_v16 = vld [vmem:[#allocation7 + $0x30] sm:$0xff]  }
  0x3c   :  { %v404_v17 = vld [vmem:[#allocation7 + $0x38] sm:$0xff]  }
  0x3d   :  { %344 = vmatpush3.bf16.msra.mxu0 %v390_v2  ;;  %364 = vmatpush3.bf16.msra.mxu1 %v398_v6  ;;  %v305_v18 = vld [vmem:[%s599_s2] ss:$0 sm:$0xff]  ;;  %s471_s2 = scalar_lea.vmem %s296_s8, 128 }
  0x3e   :  { %345 = vmatprep.subr.bf16.mxu0 %v504_v0  ;;  %365 = vmatprep.subr.bf16.mxu1 %v504_v0  ;;  %v314_v27 = vld [vmem:[%s601_s4] ss:$0 sm:$0xff]  ;;  %p472_p10 = scmp.ne.s32.totalorder %s296_s8, %s471_s2  ;;  %p477_p12 = scmp.lt.s32.totalorder %s471_s2, %s471_s2 }
  0x40   :  { %p478_p13 = por %p477_p12, %p476_p11 }
  0x41   :  { %346 = vmatpush3.bf16.msra.mxu0 %v391_v3  ;;  %366 = vmatpush3.bf16.msra.mxu1 %v399_v8 }
  0x42   :  { %347 = vmatprep.subr.bf16.mxu0 %v504_v0  ;;  %367 = vmatprep.subr.bf16.mxu1 %v504_v0  ;;  %p479_p0 = pnand %p478_p13, %p472_p10 }
  0x45   :  { %348 = vmatpush3.bf16.msra.mxu0 %v392_v5  ;;  %368 = vmatpush3.bf16.msra.mxu1 %v400_v10 }
  0x46   :  { %349 = vmatprep.subr.bf16.mxu0 %v504_v0  ;;  %369 = vmatprep.subr.bf16.mxu1 %v504_v0 }
  0x49   :  { %350 = vmatpush3.bf16.msra.mxu0 %v393_v7  ;;  %370 = vmatpush3.bf16.msra.mxu1 %v401_v12 }
  0x4a   :  { %351 = vmatprep.subr.bf16.mxu0 %v504_v0  ;;  %371 = vmatprep.subr.bf16.mxu1 %v504_v0 }
  0x4d   :  { %352 = vmatpush3.bf16.msra.mxu0 %v394_v9  ;;  %372 = vmatpush3.bf16.msra.mxu1 %v402_v14 }
  0x4e   :  { %353 = vmatprep.subr.bf16.mxu0 %v504_v0  ;;  %373 = vmatprep.subr.bf16.mxu1 %v504_v0 }
  0x51   :  { %354 = vmatpush3.bf16.msra.mxu0 %v395_v11  ;;  %374 = vmatpush3.bf16.msra.mxu1 %v403_v16 }
  0x52   :  { %355 = vmatprep.subr.bf16.mxu0 %v504_v0  ;;  %375 = vmatprep.subr.bf16.mxu1 %v504_v0 }
  0x55   :  { %356 = vmatpush3.bf16.msra.mxu0 %v396_v13  ;;  %376 = vmatpush3.bf16.msra.mxu1 %v404_v17 }
  0x58   :  { %358 = vmatmul.mubr.bf16.vlgmr.msra.gmra.mrb[0].mxu0 %v61_v15 }
 0x12b   :  { %v167_v19 = vpop.f32.mrb[0].mxu0 }
 0x12c   :  { %v168_v20 = vadd.f32 %v305_v18, %v167_v19  ;;  %v359_v21 = vpop.f32.mrb[1].mxu0 }
 0x12d   :  { %v170_v22 = vpop.f32.mrb[2].mxu0 }
 0x12e   :  { %v173_v23 = vmul.f32 %v168_v20, %v168_v20  ;;  %v360_v24 = vpop.f32.mrb[3].mxu0 }
 0x130   :  { %v174_v25 = vmul.f32 %v173_v23, %v168_v20 }
 0x132   :  { %v175_v26 = vpack.c.bf16 %v174_v25, %v174_v25 }
 0x134   :  { %378 = vmatmul.mubr.bf16.vlgmr.msra.gmra.mrb[0].mxu1 %v175_v26 }
 0x207   :  { %v281_v28 = vpop.f32.mrb[0].mxu1 }
 0x208   :  { %v282_v29 = vadd.f32 %v314_v27, %v281_v28  ;;  %v379_v30 = vpop.f32.mrb[1].mxu1 }
 0x209   :  { %v284_v31 = vpop.f32.mrb[2].mxu1 }
 0x20a   :  { %v287_v32 = vmax.f32 %v282_v29, 0.0  ;;  %v380_v33 = vpop.f32.mrb[3].mxu1 }
 0x20c   :  { %288 = vst [vmem:[#allocation8] sm:$0xff] %v287_v32 }
 0x20d   :  { %482 = shalt.err (!%p479_p0)
}
 0x20e   :  { %s483_s4 = scalar_lea.hbm %s602_s5, 128 }
 0x20f   :  { %p484_p1 = scmp.ne.s32.totalorder %s602_s5, %s483_s4  ;;  %p487_p2 = scmp.lt.u32.totalorder %s483_s4, %s602_s5 }
 0x211   :  { %p489_p3 = pnand %p487_p2, %p484_p1 }
 0x213   :  { %492 = shalt.err (!%p489_p3)
}
 0x214   :  { %298 = dma.vmem_to_hbm [thread:$0]  %s296_s8, 128, %s602_s5, [#allocation4]  }
 0x215   :  { %497 = dma.done.wait [#allocation4], 128  }
 0x216   :  { %498 = vsyncadd [#allocation4], 4294967168 }
 0x217   :  { %302 = vsyncpa [#allocation3], 1 }
 0x218   :  { %303 = vsyncpa [#allocation6], 1 }
 0x219   :  { %304 = vsyncpa [#allocation4], 1 }

</bundles_post_ra>
